<compile_context>
chip_gen: v5e
topology: v5e:2x2
jax: 0.10.0
libtpu: 0.0.40
codegen_flags: <defaults>
</compile_context>

<pallas_src>
import functools
import math

import jax
import jax.numpy as jnp
from jax.experimental import pallas as pl
from jax.experimental.pallas import tpu as pltpu

_LANE = 128          # vreg lane width
_SUBLANE_BF16 = 16   # bf16 sublane tile (f32 needs 8; 16 satisfies both)


def _round_up(n, m):
    return ((n + m - 1) // m) * m


def _pad2d(a, rows, cols):
    return jnp.pad(a, ((0, rows - a.shape[0]), (0, cols - a.shape[1])))


def _actor3sigma_kernel(x_ref,
                        w1_ref, b1_ref,
                        w2_ref, b2_ref,
                        w34_ref, b34_ref,
                        out_ref,
                        *, log_max_std, n_out):
    # fc1 -> tanh   (bf16 MXU operands, f32 accumulate, f32 bias/activation)
    h1 = jnp.tanh(
        jnp.dot(x_ref[...], w1_ref[...], preferred_element_type=jnp.float32)
        + b1_ref[...]
    )
    # fc2 -> tanh
    h2 = jnp.tanh(
        jnp.dot(h1.astype(jnp.bfloat16), w2_ref[...],
                preferred_element_type=jnp.float32)
        + b2_ref[...]
    )
    # fc3|fc4 fused into one MXU pass that already yields the lane-packed
    # layout: lanes [0, n_out) = mu pre-activation, [n_out, 2*n_out) = z4.
    z = (jnp.dot(h2.astype(jnp.bfloat16), w34_ref[...],
                 preferred_element_type=jnp.float32)
         + b34_ref[...])

    # logstd = min(z4, log(max_std)) applied only to the logstd lanes via a
    # cheap VPU select (no cross-lane movement). mu lanes pass through.
    col = jax.lax.broadcasted_iota(jnp.int32, z.shape, dimension=1)
    out_ref[...] = jnp.where(col < n_out, z, jnp.minimum(z, log_max_std))


def prepare_actor3sigma_params(params, max_std=1.0):
    """Pad / fuse / cast weights ONCE (cache the result; reuse across calls)."""
    assert max_std > 0.0, "max_std must be > 0"

    num_inputs = params["w1"].shape[0]
    h1 = params["w1"].shape[1]
    h2 = params["w2"].shape[1]
    n_out = params["w3"].shape[1]

    in_pad = _round_up(num_inputs, _LANE)
    h1_pad = _round_up(h1, _LANE)
    h2_pad = _round_up(h2, _LANE)
    # Tight-pack the real fc3|fc4 columns, then pad once to a lane-dense slab.
    slab = _round_up(2 * n_out, _LANE)

    f32 = jnp.float32
    bf16 = jnp.bfloat16

    w1 = _pad2d(params["w1"].astype(f32), in_pad, h1_pad).astype(bf16)
    b1 = _pad2d(params["b1"].astype(f32), 1, h1_pad)
    w2 = _pad2d(params["w2"].astype(f32), h1_pad, h2_pad).astype(bf16)
    b2 = _pad2d(params["b2"].astype(f32), 1, h2_pad)

    w34 = jnp.concatenate(
        [params["w3"].astype(f32), params["w4"].astype(f32)], axis=1)
    w34 = _pad2d(w34, h2_pad, slab).astype(bf16)
    b34 = jnp.concatenate(
        [params["b3"].astype(f32), params["b4"].astype(f32)], axis=1)
    b34 = _pad2d(b34, 1, slab)

    return dict(
        w1=w1, b1=b1, w2=w2, b2=b2, w34=w34, b34=b34,
        num_inputs=num_inputs, num_outputs=n_out,
        in_pad=in_pad, slab=slab,
        log_max_std=float(math.log(max_std)),
    )


def actor3sigma_forward(x, prep, tile_batch=1024):
    """Fused Actor3Sigma forward.

    x: [B, num_inputs] float32
    prep: output of prepare_actor3sigma_params()
    returns (mu, std, logstd), each [B, num_outputs] float32
    """
    B = x.shape[0]
    n_out = prep["num_outputs"]
    in_pad = prep["in_pad"]
    slab = prep["slab"]

    h1_pad = prep["w1"].shape[1]
    h2_pad = prep["w2"].shape[1]

    # >= 2 grid steps so both v7x TensorCores get work; tiles sublane-aligned
    # for the bf16 input; tile_batch caps the per-step VMEM footprint.
    n_tiles = max(2, -(-B // int(tile_batch)))
    tb = _round_up(-(-B // n_tiles), _SUBLANE_BF16)
    b_pad = n_tiles * tb

    # Only the activation is padded per call (weights are pre-padded/cached).
    # bf16 x halves input DMA bytes; zero-padding is numerically exact.
    x_pad = _pad2d(x.astype(jnp.bfloat16), b_pad, in_pad)

    def tiled(shape):
        return pl.BlockSpec(shape, lambda i: (i, 0))

    def resident(shape):
        # Constant block index -> stays VMEM-resident, no per-step re-DMA.
        return pl.BlockSpec(shape, lambda i: (0, 0))

    kernel = functools.partial(
        _actor3sigma_kernel,
        log_max_std=prep["log_max_std"],
        n_out=n_out,
    )

    out = pl.pallas_call(
        kernel,
        out_shape=jax.ShapeDtypeStruct((b_pad, slab), jnp.float32),
        grid=(n_tiles,),
        in_specs=[
            tiled((tb, in_pad)),            # x  (batch-tiled, pipelined, bf16)
            resident((in_pad, h1_pad)),     # w1 (bf16)
            resident((1, h1_pad)),          # b1 (f32)
            resident((h1_pad, h2_pad)),     # w2 (bf16)
            resident((1, h2_pad)),          # b2 (f32)
            resident((h2_pad, slab)),       # w3|w4 fused, lane-packed (bf16)
            resident((1, slab)),            # b3|b4 fused (f32)
        ],
        out_specs=tiled((tb, slab)),        # single packed output stream
        compiler_params=pltpu.CompilerParams(
            dimension_semantics=("parallel",),   # shard batch tiles on 2-TC parts
            vmem_limit_bytes=32 * 1024 * 1024,
        ),
    )(x_pad, prep["w1"], prep["b1"], prep["w2"], prep["b2"],
      prep["w34"], prep["b34"])

    mu = out[:B, :n_out]
    logstd = out[:B, n_out:2 * n_out]
    std = jnp.exp(logstd)                   # tiny: only B*n_out real elements
    return mu, std, logstd


def init_params(key, num_inputs, hidden1, hidden2, num_outputs):
    """Deterministic init mimicking nn.Linear (uniform +-1/sqrt(fan_in)),
    with fc3/fc4 weights scaled by 0.1 and biases zeroed (as in __init__)."""
    ks = jax.random.split(key, 8)

    def linear(kw, kb, fan_in, fan_out):
        bound = 1.0 / math.sqrt(fan_in)
        w = jax.random.uniform(kw, (fan_in, fan_out), jnp.float32, -bound, bound)
        b = jax.random.uniform(kb, (1, fan_out), jnp.float32, -bound, bound)
        return w, b

    w1, b1 = linear(ks[0], ks[1], num_inputs, hidden1)
    w2, b2 = linear(ks[2], ks[3], hidden1, hidden2)
    w3, b3 = linear(ks[4], ks[5], hidden2, num_outputs)
    w4, b4 = linear(ks[6], ks[7], hidden2, num_outputs)
    # fc3.weight *= 0.1 ; fc3.bias *= 0.0 ; same for fc4
    w3 = w3 * 0.1
    b3 = b3 * 0.0
    w4 = w4 * 0.1
    b4 = b4 * 0.0
    return dict(w1=w1, b1=b1, w2=w2, b2=b2, w3=w3, b3=b3, w4=w4, b4=b4)


if __name__ == "__main__":
    # Small shapes consistent with the module: num_inputs=16, hidden1=32,
    # hidden2=32, num_outputs=8, batch=2, max_std=1.
    B, NUM_INPUTS, H1, H2, NUM_OUTPUTS = 2, 16, 32, 32, 8
    MAX_STD = 1.0

    key = jax.random.PRNGKey(0)
    kx, kp = jax.random.split(key)
    x = jax.random.normal(kx, (B, NUM_INPUTS), jnp.float32)
    params = init_params(kp, NUM_INPUTS, H1, H2, NUM_OUTPUTS)

    prep = prepare_actor3sigma_params(params, max_std=MAX_STD)  # cached once
    mu, std, logstd = actor3sigma_forward(x, prep)
    jax.block_until_ready((mu, std, logstd))

    # Reference check in plain f32 JAX (same math as the PyTorch forward).
    h1 = jnp.tanh(x @ params["w1"] + params["b1"])
    h2 = jnp.tanh(h1 @ params["w2"] + params["b2"])
    mu_ref = h2 @ params["w3"] + params["b3"]
    std_ref = jnp.clip(jnp.exp(h2 @ params["w4"] + params["b4"]), 0.0, MAX_STD)
    logstd_ref = jnp.log(std_ref)

    assert mu.shape == (B, NUM_OUTPUTS) and std.shape == (B, NUM_OUTPUTS)
    assert logstd.shape == (B, NUM_OUTPUTS)
    # bf16 MXU operands -> tolerance relaxed vs the pure-f32 version.
    TOL = 2e-2
    assert jnp.allclose(mu, mu_ref, atol=TOL), "mu mismatch"
    assert jnp.allclose(std, std_ref, atol=TOL), "std mismatch"
    assert jnp.allclose(logstd, logstd_ref, atol=TOL), "logstd mismatch"

    print("KERNEL_OK")
</pallas_src>

<mosaic_0001>
module attributes {stable_mosaic.version = 11 : i64} {
  func.func @_actor3sigma_kernel(%arg0: i32, %arg1: memref<16x128xbf16, #tpu.memory_space<vmem>>, %arg2: memref<128x128xbf16, #tpu.memory_space<vmem>>, %arg3: memref<1x128xf32, #tpu.memory_space<vmem>>, %arg4: memref<128x128xbf16, #tpu.memory_space<vmem>>, %arg5: memref<1x128xf32, #tpu.memory_space<vmem>>, %arg6: memref<128x128xbf16, #tpu.memory_space<vmem>>, %arg7: memref<1x128xf32, #tpu.memory_space<vmem>>, %arg8: memref<16x128xf32, #tpu.memory_space<vmem>>) attributes {dimension_semantics = [#tpu.dimension_semantics<parallel>], iteration_bounds = array<i64: 2>, scalar_prefetch = 0 : i64, scratch_operands = 0 : i64, tpu.core_type = #tpu.core_type<tc>, window_params = [{transform_indices = @transform_0, window_bounds = array<i64: 16, 128>}, {pipeline_mode = #tpu.pipeline_mode<synchronous>, transform_indices = @transform_1, window_bounds = array<i64: 128, 128>}, {pipeline_mode = #tpu.pipeline_mode<synchronous>, transform_indices = @transform_2, window_bounds = array<i64: 1, 128>}, {pipeline_mode = #tpu.pipeline_mode<synchronous>, transform_indices = @transform_3, window_bounds = array<i64: 128, 128>}, {pipeline_mode = #tpu.pipeline_mode<synchronous>, transform_indices = @transform_4, window_bounds = array<i64: 1, 128>}, {pipeline_mode = #tpu.pipeline_mode<synchronous>, transform_indices = @transform_5, window_bounds = array<i64: 128, 128>}, {pipeline_mode = #tpu.pipeline_mode<synchronous>, transform_indices = @transform_6, window_bounds = array<i64: 1, 128>}, {transform_indices = @transform_7, window_bounds = array<i64: 16, 128>}]} {
    %c0 = arith.constant 0 : index
    %c0_0 = arith.constant 0 : index
    %0 = vector.load %arg1[%c0, %c0_0] : memref<16x128xbf16, #tpu.memory_space<vmem>>, vector<16x128xbf16>
    %c0_1 = arith.constant 0 : index
    %c0_2 = arith.constant 0 : index
    %1 = vector.load %arg2[%c0_1, %c0_2] : memref<128x128xbf16, #tpu.memory_space<vmem>>, vector<128x128xbf16>
    %cst = arith.constant dense<0.000000e+00> : vector<16x128xf32>
    %2 = tpu.matmul %0, %1, %cst {dimension_numbers = #tpu.dot_dimension_numbers<[1], [0], [0], [1], [0, 0, 1, 1], [], []>} : vector<16x128xbf16>, vector<128x128xbf16>, vector<16x128xf32> -> vector<16x128xf32>
    %c0_3 = arith.constant 0 : index
    %c0_4 = arith.constant 0 : index
    %3 = vector.load %arg3[%c0_3, %c0_4] : memref<1x128xf32, #tpu.memory_space<vmem>>, vector<1x128xf32>
    %4 = vector.broadcast %3 : vector<1x128xf32> to vector<16x128xf32>
    %5 = arith.addf %2, %4 : vector<16x128xf32>
    %6 = math.tanh %5 : vector<16x128xf32>
    %7 = arith.truncf %6 : vector<16x128xf32> to vector<16x128xbf16>
    %c0_5 = arith.constant 0 : index
    %c0_6 = arith.constant 0 : index
    %8 = vector.load %arg4[%c0_5, %c0_6] : memref<128x128xbf16, #tpu.memory_space<vmem>>, vector<128x128xbf16>
    %cst_7 = arith.constant dense<0.000000e+00> : vector<16x128xf32>
    %9 = tpu.matmul %7, %8, %cst_7 {dimension_numbers = #tpu.dot_dimension_numbers<[1], [0], [0], [1], [0, 0, 1, 1], [], []>} : vector<16x128xbf16>, vector<128x128xbf16>, vector<16x128xf32> -> vector<16x128xf32>
    %c0_8 = arith.constant 0 : index
    %c0_9 = arith.constant 0 : index
    %10 = vector.load %arg5[%c0_8, %c0_9] : memref<1x128xf32, #tpu.memory_space<vmem>>, vector<1x128xf32>
    %11 = vector.broadcast %10 : vector<1x128xf32> to vector<16x128xf32>
    %12 = arith.addf %9, %11 : vector<16x128xf32>
    %13 = math.tanh %12 : vector<16x128xf32>
    %14 = arith.truncf %13 : vector<16x128xf32> to vector<16x128xbf16>
    %c0_10 = arith.constant 0 : index
    %c0_11 = arith.constant 0 : index
    %15 = vector.load %arg6[%c0_10, %c0_11] : memref<128x128xbf16, #tpu.memory_space<vmem>>, vector<128x128xbf16>
    %cst_12 = arith.constant dense<0.000000e+00> : vector<16x128xf32>
    %16 = tpu.matmul %14, %15, %cst_12 {dimension_numbers = #tpu.dot_dimension_numbers<[1], [0], [0], [1], [0, 0, 1, 1], [], []>} : vector<16x128xbf16>, vector<128x128xbf16>, vector<16x128xf32> -> vector<16x128xf32>
    %c0_13 = arith.constant 0 : index
    %c0_14 = arith.constant 0 : index
    %17 = vector.load %arg7[%c0_13, %c0_14] : memref<1x128xf32, #tpu.memory_space<vmem>>, vector<1x128xf32>
    %18 = vector.broadcast %17 : vector<1x128xf32> to vector<16x128xf32>
    %19 = arith.addf %16, %18 : vector<16x128xf32>
    %20 = tpu.iota {dimensions = array<i32: 1>} : vector<16x128xi32>
    %c8_i32 = arith.constant 8 : i32
    %21 = vector.broadcast %c8_i32 : i32 to vector<16x128xi32>
    %22 = arith.cmpi slt, %20, %21 : vector<16x128xi32>
    %cst_15 = arith.constant 0.000000e+00 : f32
    %23 = vector.broadcast %cst_15 : f32 to vector<16x128xf32>
    %24 = arith.minimumf %19, %23 : vector<16x128xf32>
    %25 = arith.select %22, %19, %24 : vector<16x128xi1>, vector<16x128xf32>
    %c0_16 = arith.constant 0 : index
    %c0_17 = arith.constant 0 : index
    %26 = vector.load %arg8[%c0_16, %c0_17] : memref<16x128xf32, #tpu.memory_space<vmem>>, vector<16x128xf32>
    tpu.vector_store %arg8[%c0_16, %c0_17], %25 {strides = array<i32>} : memref<16x128xf32, #tpu.memory_space<vmem>>, vector<16x128xf32>,
    return
  }
  func.func @transform_0(%arg0: i32) -> (i32, i32) {
    %c0_i32 = arith.constant 0 : i32
    %c0_i32_0 = arith.constant 0 : i32
    return %arg0, %c0_i32 : i32, i32
  }
  func.func @transform_1(%arg0: i32) -> (i32, i32) {
    %c0_i32 = arith.constant 0 : i32
    %c0_i32_0 = arith.constant 0 : i32
    %c0_i32_1 = arith.constant 0 : i32
    return %c0_i32, %c0_i32_0 : i32, i32
  }
  func.func @transform_2(%arg0: i32) -> (i32, i32) {
    %c0_i32 = arith.constant 0 : i32
    %c0_i32_0 = arith.constant 0 : i32
    %c0_i32_1 = arith.constant 0 : i32
    return %c0_i32, %c0_i32_0 : i32, i32
  }
  func.func @transform_3(%arg0: i32) -> (i32, i32) {
    %c0_i32 = arith.constant 0 : i32
    %c0_i32_0 = arith.constant 0 : i32
    %c0_i32_1 = arith.constant 0 : i32
    return %c0_i32, %c0_i32_0 : i32, i32
  }
  func.func @transform_4(%arg0: i32) -> (i32, i32) {
    %c0_i32 = arith.constant 0 : i32
    %c0_i32_0 = arith.constant 0 : i32
    %c0_i32_1 = arith.constant 0 : i32
    return %c0_i32, %c0_i32_0 : i32, i32
  }
  func.func @transform_5(%arg0: i32) -> (i32, i32) {
    %c0_i32 = arith.constant 0 : i32
    %c0_i32_0 = arith.constant 0 : i32
    %c0_i32_1 = arith.constant 0 : i32
    return %c0_i32, %c0_i32_0 : i32, i32
  }
  func.func @transform_6(%arg0: i32) -> (i32, i32) {
    %c0_i32 = arith.constant 0 : i32
    %c0_i32_0 = arith.constant 0 : i32
    %c0_i32_1 = arith.constant 0 : i32
    return %c0_i32, %c0_i32_0 : i32, i32
  }
  func.func @transform_7(%arg0: i32) -> (i32, i32) {
    %c0_i32 = arith.constant 0 : i32
    %c0_i32_0 = arith.constant 0 : i32
    return %arg0, %c0_i32 : i32, i32
  }
}

</mosaic_0001>

<bundles_post_ra>
// kernel: tpu_custom_call.1
= control target key start
LH: loop header
LB: loop body
LE: loop exit
PB: predicated region body
PF: predicated region fallthrough
CT: control target
= control target key end

     0   :  { %s1400_s0 = inlined_call_operand.hbm [shape: bf16[32,128], index: 0, kind: input, shape index: {}]   ;;  %s1401_s1 = inlined_call_operand.hbm [shape: bf16[128,128], index: 1, kind: input, shape index: {}]   ;;  %s1402_s2 = inlined_call_operand.vmem [shape: f32[1,128], index: 2, kind: input, shape index: {}]   ;;  %s1403_s3 = inlined_call_operand.hbm [shape: bf16[128,128], index: 3, kind: input, shape index: {}]   ;;  %s1404_s4 = inlined_call_operand.vmem [shape: f32[1,128], index: 4, kind: input, shape index: {}]   ;;  %s1405_s5 = inlined_call_operand.hbm [shape: bf16[128,128], index: 5, kind: input, shape index: {}]   ;;  %s1406_s6 = inlined_call_operand.vmem [shape: f32[1,128], index: 6, kind: input, shape index: {}]   ;;  %s1407_s7 = inlined_call_operand.hbm [shape: f32[32,128], index: 7, kind: output, shape index: {}]  }
   0x1   :  { %1410 = sst [smem:[#allocation15_spill]] %s1401_s1 }
   0x2   :  { %12 = vsyncpa [#allocation3], 0 }
   0x3   :  { %14 = vsyncpa [#allocation3 + $0x1], 0 }
   0x4   :  { %15 = vsyncpa [#allocation6], 0 }
   0x5   :  { %16 = vsyncpa [#allocation9], 0 }
   0x6   :  { %17 = vsyncpa [#allocation4], 0 }
   0x7   :  { %19 = vsyncpa [#allocation4 + $0x1], 0  ;;  %s1220_s24 = smov 0   ;;  %s1222_s25 = smov 0  }
   0x8   :  { %s1224_s26 = smov 0   ;;  %s1226_s27 = smov 0  }
   0x9 LB: > { %s1241_s28 = sadd.s32 4294967295, %s1171_s27   ;;  %s738_s29 = sadd.s32 4294967294, %s1171_s27   ;;  %s1171_s27 = sphi %s1226_s27, %s1424_s27   ;;  %s1167_s26 = sphi %s1224_s26, %s1423_s26   ;;  %s1163_s25 = sphi %s1222_s25, %s1422_s25   ;;  %s1159_s24 = sphi %s1220_s24, %s1421_s24  }
   0xa   : > { %p45_p0 = scmp.ne.s32.totalorder %s1163_s25, %s1159_s24  ;;  %p46_p1 = scmp.eq.s32.totalorder %s1241_s28, 0 }
   0xb   : > { %p195_p2 = scmp.eq.s32.totalorder %s1241_s28, 1  ;;  %p201_p3 = scmp.eq.s32.totalorder %s738_s29, 1 }
   0xc   : > { %p1250_p4 = por %p46_p1, %p45_p0  ;;  %p739_p5 = scmp.ge.s32.totalorder %s1171_s27, 1 }
   0xd   : > { %p1255_p6 = por %p201_p3, %p45_p0  ;;  %p208_p7 = scmp.lt.s32.totalorder %s1171_s27, 3 }
   0xe   : > { %s1413_s1 = sld [smem:[#allocation15_spill]]  ;;  %s1173_s13 = smov [#allocation5]  }
   0xf   : > { %p1263_p8 = pnand %p739_p5, %p208_p7  ;;  %s221_s14 = sshll.u32 %s1173_s13, 4  ;;  %s222_s14 = int_to_ptr.vmem [resolvable:$true] %s221_s14 }
  0x10   : > { %s236_s18 = sshll.u32 %s1403_s3, 4  ;;  %s1408_s19 = smov 64   ;;  %s237_s18 = int_to_ptr.hbm [resolvable:$true] %s236_s18 }
  0x11   : > { %p901_p9 = pneg %p1263_p8  ;;  %s1409_s20 = smov 4  }
  0x12   : > { %s1176_s21 = smov [#allocation7]   ;;  %s253_s9 = sshll.u32 %s1405_s5, 4  ;;  %s254_s9 = int_to_ptr.hbm [resolvable:$true] %s253_s9 }
  0x13   : > { %p1271_p10 = pnand %p901_p9, %p46_p1  ;;  %s238_s22 = sshll.u32 %s1176_s21, 4  ;;  %s239_s22 = int_to_ptr.vmem [resolvable:$true] %s238_s22 }
  0x14   : > { %s219_s11 = sshll.u32 %s1413_s1, 4  ;;  %s1177_s10 = smov [#allocation8]   ;;  %s220_s11 = int_to_ptr.hbm [resolvable:$true] %s219_s11 }
  0x15   : > { %904 = dma.hbm_to_vmem [thread:$0]  (!%p1271_p10), %s220_s11, 1024, %s222_s14, [#allocation6], %s1408_s19, %s1408_s19, %s1409_s20  }
  0x16   : > { %907 = dma.hbm_to_vmem [thread:$0]  (!%p1271_p10), %s237_s18, 1024, %s239_s22, [#allocation6], %s1408_s19, %s1408_s19, %s1409_s20  }
  0x17   : > { %s255_s11 = sshll.u32 %s1177_s10, 4  ;;  %s1293_s13 = sadd.s32 1, %s1171_s27   ;;  %s256_s11 = int_to_ptr.vmem [resolvable:$true] %s255_s11 }
  0x18   : > { %910 = dma.hbm_to_vmem [thread:$0]  (!%p1271_p10), %s254_s9, 1024, %s256_s11, [#allocation9], %s1408_s19, %s1408_s19, %s1409_s20  }
  0x19   : > { %s29_s14 = ssub.s32 %s1171_s27, %s1293_s13  ;;  %s32_s16 = sadd.s32 1, %s1167_s26 }
  0x1a   : > { %p30_p12 = scmp.eq.s32.totalorder %s29_s14, 0  ;;  %p39_p13 = scmp.ne.s32.totalorder %s1167_s26, %s1163_s25 }
  0x1b   : > { %p40_p0 = scmp.eq.s32.totalorder %s1171_s27, 0  ;;  %p922_p5 = scmp.lt.s32.totalorder %s1171_s27, 2 }
  0x1c   : > { %s1307_s17 = scalar_select %p30_p12, %s1167_s26, %s32_s16  }
  0x1d   : > { %p1311_p3 = por %p195_p2, %p39_p13  ;;  %s272_s21 = sand.u32 1, %s1167_s26  }
  0x1e   : > { %s858_s15 = sshll.u32 %s1171_s27, 3  ;;  %p41_p7 = por %p40_p0, %p39_p13 }
  0x1f   : > { %s744_s22 = sshll.u32 %s272_s21, 3  ;;  %s281_s9 = scalar_lea.hbm %s1400_s0, %s858_s15 }
  0x20   : > { %s282_s10 = sshll.u32 %s281_s9, 4  ;;  %s276_s11 = scalar_lea.vmem [#allocation2], %s744_s22  ;;  %s283_s10 = int_to_ptr.hbm [resolvable:$true] %s282_s10 }
  0x21   : > { %s284_s14 = sshll.u32 %s276_s11, 4  ;;  %p1321_p9 = pnand %p922_p5, %p41_p7  ;;  %s285_s14 = int_to_ptr.vmem [resolvable:$true] %s284_s14 }
  0x22   : > { %s273_s19 = scalar_lea.sflag [#allocation3], %s272_s21  ;;  %s1067_s20 = sshra.s32 %s283_s10, 4  ;;  %s1068_s20 = int_to_ptr.hbm [resolvable:$true] %s1067_s20 }
  0x23   : > { %s1069_s1 = scalar_lea.hbm %s1068_s20, 8  ;;  %p1071_p10 = pneg %p1321_p9 }
  0x24   : > { %p1070_p2 = scmp.ne.s32.totalorder %s1068_s20, %s1069_s1  ;;  %s1074_s22 = scalar_lea.hbm %s1400_s0, 16 }
  0x25   : > { %p1075_p0 = scmp.lt.s32.totalorder %s1068_s20, %s1400_s0  ;;  %p1076_p5 = scmp.lt.s32.totalorder %s1074_s22, %s1069_s1 }
  0x26   : > { %p1072_p12 = pnand %p1071_p10, %p1070_p2 }
  0x27   : > { %p1077_p7 = por %p1076_p5, %p1075_p0 }
  0x28   : > { %p1073_p13 = pneg %p1072_p12 }
  0x2a   : > { %p1078_p11 = pnand %p1077_p7, %p1073_p13 }
  0x2c   : > { %1081 = shalt.err (!%p1078_p11)
}
  0x2d   : > { %s1418_s21 = smov 4   ;;  %s1419_s11 = smov 64  }
  0x2e   : > { %914 = dma.hbm_to_vmem [thread:$0]  (!%p1321_p9), %s283_s10, 128, %s285_s14, %s273_s19, %s1419_s11, %s1419_s11, %s1418_s21  }
  0x2f   : > { %296 = sbr.rel (%p1263_p8) target bundleno = 528 (0x210), region = 48  ;;  %s1341_s15 = sand.u32 (!%p1263_p8), 1, %s1163_s25  }
  0x30   : > { %s748_s20 = sshll.u32 (!%p1263_p8), %s1341_s15, 3  ;;  %s299_s1 = scalar_lea.sflag (!%p1263_p8), [#allocation3], %s1341_s15 }
  0x31   : > { %s302_s23 = scalar_lea.vmem (!%p1263_p8), [#allocation2], %s748_s20 }
  0x34   : > { %1142 = dma.done.wait (%p1250_p4), %s299_s1, 128  }
  0x35   : > { %1144 = vsyncadd (%p1250_p4), %s299_s1, 4294967168 }
  0x36   : > { %1146 = dma.done.wait (%p46_p1), [#allocation6], 2048  }
  0x37   : > { %1148 = vsyncadd (%p46_p1), [#allocation6], 4294965248 }
  0x38   : > { %1150 = dma.done.wait (%p46_p1), [#allocation9], 1024  }
  0x39   : > { %1152 = vsyncadd (%p46_p1), [#allocation9], 4294966272  ;;  %v867_v0 = vld [vmem:[#allocation5 + $0x38] sm:$0xff]  ;;  %v866_v1 = vld [vmem:[#allocation5 + $0x30] sm:$0xff]  ;;  %v611_v41 = vlaneseq  ;;  %s752_s22 = sshll.u32 %s1341_s15, 4  ;;  %s884_s29 = sshll.u32 %s1241_s28, 4 }
  0x3a   : > { %427 = vmatpush.bf16.msra.mxu0 %v867_v0  ;;  %v875_v2 = vld [vmem:[#allocation7 + $0x38] sm:$0xff]  ;;  %v874_v3 = vld [vmem:[#allocation7 + $0x30] sm:$0xff]  ;;  %v865_v4 = vld [vmem:[#allocation5 + $0x28] sm:$0xff]  ;;  %s632_s11 = scalar_lea.hbm %s1407_s7, %s884_s29  ;;  %s348_s20 = scalar_lea.vmem [#allocation10], %s752_s22 }
  0x3b   : > { %512 = vmatpush.bf16.msra.mxu1 %v875_v2  ;;  %v873_v5 = vld [vmem:[#allocation7 + $0x28] sm:$0xff]  ;;  %v864_v6 = vld [vmem:[#allocation5 + $0x20] sm:$0xff]  ;;  %v863_v7 = vld [vmem:[#allocation5 + $0x18] sm:$0xff]  ;;  %v612_v43 = vand.u32 127, %v611_v41  ;;  %s633_s1 = sshll.u32 %s348_s20, 4  ;;  %s621_s30 = scalar_lea.sflag [#allocation4], %s1341_s15  ;;  %s634_s1 = int_to_ptr.vmem [resolvable:$true] %s633_s1 }
  0x3c   : > { %v862_v8 = vld [vmem:[#allocation5 + $0x10] sm:$0xff]  ;;  %v861_v9 = vld [vmem:[#allocation5 + $0x8] sm:$0xff]  ;;  %v860_v10 = vld [vmem:[#allocation5] sm:$0xff]  ;;  %s1117_s14 = scalar_lea.hbm %s1407_s7, 32 }
  0x3d   : > { %v859_v11 = vld [vmem:[%s302_s23] sm:$0xff]  ;;  %v872_v12 = vld [vmem:[#allocation7 + $0x20] sm:$0xff]  ;;  %v869_v15 = vld [vmem:[#allocation7 + $0x8] sm:$0xff]  ;;  %vm613_vm0 = vcmp.lt.s32.totalorder %v612_v43, 8  ;;  %s635_s23 = sshll.u32 %s632_s11, 4  ;;  %s636_s23 = int_to_ptr.hbm [resolvable:$true] %s635_s23 }
  0x3e   : > { %428 = vmatpush.bf16.msra.mxu0 %v866_v1  ;;  %v871_v13 = vld [vmem:[#allocation7 + $0x18] sm:$0xff]  ;;  %v870_v14 = vld [vmem:[#allocation7 + $0x10] sm:$0xff]  ;;  %v868_v16 = vld [vmem:[#allocation7] sm:$0xff]  ;;  %s1111_s28 = sshra.s32 %s636_s23, 4  ;;  %s1112_s28 = int_to_ptr.hbm [resolvable:$true] %s1111_s28 }
  0x3f   : > { %513 = vmatpush.bf16.msra.mxu1 %v874_v3  ;;  %v883_v17 = vld [vmem:[#allocation8 + $0x38] sm:$0xff]  ;;  %v882_v18 = vld [vmem:[#allocation8 + $0x30] sm:$0xff]  ;;  %v881_v19 = vld [vmem:[#allocation8 + $0x28] sm:$0xff]  ;;  %s1113_s12 = scalar_lea.hbm %s1112_s28, 16  ;;  %p1118_p11 = scmp.lt.s32.totalorder %s1112_s28, %s1407_s7 }
  0x40   : > { %597 = vmatpush.bf16.msra.mxu2 %v883_v17  ;;  %v966_v21 = vld [vmem:[%s1402_s2] ss:$0 sm:$0xff]  ;;  %v880_v28 = vld [vmem:[#allocation8 + $0x20] sm:$0xff]  ;;  %v879_v29 = vld [vmem:[#allocation8 + $0x18] sm:$0xff]  ;;  %p1114_p1 = scmp.ne.s32.totalorder %s1112_s28, %s1113_s12  ;;  %p1119_p9 = scmp.lt.s32.totalorder %s1117_s14, %s1113_s12 }
  0x41   : > { %v878_v30 = vld [vmem:[#allocation8 + $0x10] sm:$0xff]  ;;  %v877_v31 = vld [vmem:[#allocation8 + $0x8] sm:$0xff]  ;;  %v876_v32 = vld [vmem:[#allocation8] sm:$0xff] }
  0x42   : > { %429 = vmatpush.bf16.msra.mxu0 %v865_v4  ;;  %v967_v34 = vld [vmem:[%s1404_s4] ss:$0 sm:$0xff]  ;;  %p1115_p4 = pnand %p1114_p1, %p1311_p3  ;;  %p1120_p2 = por %p1119_p9, %p1118_p11 }
  0x43   : > { %514 = vmatpush.bf16.msra.mxu1 %v873_v5  ;;  %v968_v42 = vld [vmem:[%s1406_s6] ss:$0 sm:$0xff] }
  0x44   : > { %598 = vmatpush.bf16.msra.mxu2 %v882_v18  ;;  %p1116_p8 = pneg %p1115_p4 }
  0x46   : > { %430 = vmatpush.bf16.msra.mxu0 %v864_v6  ;;  %p1121_p10 = pnand %p1120_p2, %p1116_p8 }
  0x47   : > { %515 = vmatpush.bf16.msra.mxu1 %v872_v12 }
  0x48   : > { %599 = vmatpush.bf16.msra.mxu2 %v881_v19 }
  0x4a   : > { %431 = vmatpush.bf16.msra.mxu0 %v863_v7 }
  0x4b   : > { %516 = vmatpush.bf16.msra.mxu1 %v871_v13 }
  0x4c   : > { %600 = vmatpush.bf16.msra.mxu2 %v880_v28 }
  0x4e   : > { %432 = vmatpush.bf16.msra.mxu0 %v862_v8 }
  0x4f   : > { %517 = vmatpush.bf16.msra.mxu1 %v870_v14 }
  0x50   : > { %601 = vmatpush.bf16.msra.mxu2 %v879_v29 }
  0x52   : > { %433 = vmatpush.bf16.msra.mxu0 %v861_v9 }
  0x53   : > { %518 = vmatpush.bf16.msra.mxu1 %v869_v15 }
  0x54   : > { %602 = vmatpush.bf16.msra.mxu2 %v878_v30 }
  0x56   : > { %434 = vmatpush.bf16.msra.mxu0 %v860_v10 }
  0x57   : > { %519 = vmatpush.bf16.msra.mxu1 %v868_v16 }
  0x58   : > { %603 = vmatpush.bf16.msra.mxu2 %v877_v31 }
  0x59   : > { %435 = vmatmul.bf16.vlgmr.msra.gmra.mxu0 %v859_v11 }
  0x5c   : > { %604 = vmatpush.bf16.msra.mxu2 %v876_v32 }
  0xd6   : > { %v436_v20 = vpop.f32.mrf.mxu0 }
  0xd7   : > { %v437_v22 = vadd.f32 %v966_v21, %v436_v20 }
  0xd9   : > { %969 = vtanh.f32 %v437_v22 }
  0xde   : > { %v438_v23 = vpop.f32.mrf.mxu0 }
  0xdf   : > { %v439_v24 = vadd.f32 %v966_v21, %v438_v23  ;;  %v970_v25 = vpop.eup %969 }
  0xe1   : > { %971 = vtanh.f32 %v439_v24 }
  0xe7   : > { %v972_v26 = vpop.eup %971 }
  0xe8   : > { %v443_v27 = vpack.c.bf16 %v972_v26, %v970_v25 }
  0xea   : > { %520 = vmatmul.bf16.vlgmr.msra.gmra.mxu1 %v443_v27 }
 0x167   : > { %v521_v33 = vpop.f32.mrf.mxu1 }
 0x168   : > { %v522_v35 = vadd.f32 %v967_v34, %v521_v33 }
 0x16a   : > { %973 = vtanh.f32 %v522_v35 }
 0x16f   : > { %v523_v36 = vpop.f32.mrf.mxu1 }
 0x170   : > { %v524_v37 = vadd.f32 %v967_v34, %v523_v36  ;;  %v974_v38 = vpop.eup %973 }
 0x172   : > { %975 = vtanh.f32 %v524_v37 }
 0x178   : > { %v976_v39 = vpop.eup %975 }
 0x179   : > { %v528_v40 = vpack.c.bf16 %v976_v39, %v974_v38 }
 0x17b   : > { %605 = vmatmul.bf16.vlgmr.msra.gmra.mxu2 %v528_v40 }
 0x1fe   : > { %v606_v44 = vpop.f32.mrf.mxu2 }
 0x1ff   : > { %v607_v45 = vadd.f32 %v968_v42, %v606_v44 }
 0x201   : > { %v614_v46 = vmin.f32 %v607_v45, 0.0 }
 0x203   : > { %v616_v47 = vsel %vm613_vm0, %v607_v45, %v614_v46 }
 0x204   : > { %618 = vst [vmem:[%s348_s20] sm:$0xff] %v616_v47 }
 0x206   : > { %v608_v48 = vpop.f32.mrf.mxu2 }
 0x207   : > { %v609_v49 = vadd.f32 %v968_v42, %v608_v48 }
 0x209   : > { %v615_v50 = vmin.f32 %v609_v49, 0.0 }
 0x20b   : > { %v617_v51 = vsel %vm613_vm0, %v609_v49, %v615_v50 }
 0x20c   : > { %619 = vst [vmem:[%s348_s20 + $0x8] sm:$0xff] %v617_v51 }
 0x20d   : > { %1124 = shalt.err (!%p1121_p10)
}
 0x20e   : > { %s1178_s15 = smov 128   ;;  %s1179_s29 = smov 8  }
 0x20f   : > { %899 = dma.vmem_to_hbm [thread:$0]  (%p1311_p3), %s634_s1, 256, %s636_s23, %s621_s30, %s1178_s15, %s1178_s15, %s1179_s29  }
 0x210 PF: > { %s650_s9 = sand.u32 1, %s1159_s24   ;;  %p1420_p12 = scmp.ge.s32.totalorder %s1171_s27, 2 }
 0x211   : > { %s651_s21 = scalar_lea.sflag [#allocation4], %s650_s9 }
 0x212   : > { %p916_p13 = pnand %p1420_p12, %p1255_p6 }
 0x214   : > { %p917_p0 = pneg %p916_p13 }
 0x216   : > { %1154 = dma.done.wait (%p917_p0), %s651_s21, 256  }
 0x217   : > { %1156 = vsyncadd (%p917_p0), %s651_s21, 4294967040  ;;  %p22_p5 = scmp.ge.s32.totalorder %s1293_s13, 4   ;;  %s1421_s24 = smov %s1163_s25 }
 0x218   : > { %s1422_s25 = smov %s1167_s26  ;;  %s1423_s26 = smov %s1307_s17 }
 0x219   : > { %s1424_s27 = smov %s1293_s13  ;;  %24 = sbr.rel (!%p22_p5) target bundleno = 9 (0x9), region = 105 }
 0x21e   :  { %657 = vsyncpa [#allocation3], 1 }
 0x21f   :  { %659 = vsyncpa [#allocation3 + $0x1], 1 }
 0x220   :  { %660 = vsyncpa [#allocation6], 1 }
 0x221   :  { %661 = vsyncpa [#allocation9], 1 }
 0x222   :  { %662 = vsyncpa [#allocation4], 1 }
 0x223   :  { %664 = vsyncpa [#allocation4 + $0x1], 1 }

</bundles_post_ra>
